<compile_context>
chip_gen: v6e
topology: v6e:2x2x1
jax: 0.10.0
libtpu: 0.0.40
codegen_flags: <defaults>
</compile_context>

<pallas_src>
import functools

import jax
import jax.numpy as jnp
from jax.experimental import pallas as pl
from jax.experimental.pallas import tpu as pltpu


def _round_up(x: int, m: int) -> int:
    return ((x + m - 1) // m) * m


def _fused_linear_mse_kernel(x_ref, w_ref, out_ref, *, total_rows, tile_rows, n_out):
    """Partial SSE for one batch tile.

    partial = sum_rows sum_n (x_tile @ W.T - 1)^2, broadcast into a lane-dense
    (1, 8, 128) output block (the wrapper reads element [:, 0, 0]).
    """
    i = pl.program_id(0)
    x = x_ref[...]            # (tile_rows, K) f32
    w = w_ref[...]            # (n_out, K)     f32, stays resident (index_map is constant)

    # Skip the MXU on purpose: K=32, N=2 would be <1% utilization and this
    # kernel is HBM-read bound on x anyway.  Two VPU multiplies + two lane
    # reductions per tile are essentially free under the DMA.
    per_row_err = jnp.zeros((tile_rows, 1), jnp.float32)
    for n in range(n_out):                                          # n_out == 2, static unroll
        y_n = jnp.sum(x * w[n:n + 1, :], axis=-1, keepdims=True)    # (tile_rows, 1)
        d = y_n - 1.0
        per_row_err = per_row_err + d * d

    if total_rows % tile_rows != 0:
        # The final block extends past B; zero out the padded / garbage rows.
        # (Cost: one iota + one select on (tile_rows, 1) — negligible vs the DMA.)
        row = i * tile_rows + jax.lax.broadcasted_iota(jnp.int32, (tile_rows, 1), 0)
        per_row_err = jnp.where(row < total_rows, per_row_err, 0.0)

    partial = jnp.sum(per_row_err)                                   # scalar f32
    out_ref[...] = jnp.broadcast_to(partial, out_ref.shape).astype(out_ref.dtype)


@functools.partial(jax.jit, static_argnames=("tile_rows",))
def boring_model_forward(x, weight, *, tile_rows=None):
    """Pallas equivalent of BoringModel.forward: MSE(Linear(32,2,bias=False)(x), ones)."""
    B, K = x.shape
    n_out, k2 = weight.shape
    assert K == k2, "weight must be (out_features, in_features) matching x's feature dim"

    if tile_rows is None:
        # Large batch tiles amortize the ~0.35 us per-grid-step overhead.
        # VMEM cost per buffer: tile_rows x 128(lane-padded) x 4 B = 4 MiB at 8192 rows,
        # x2 for double buffering = 8 MiB, comfortably inside every chip's scoped VMEM.
        tile_rows = min(8192, _round_up(B, 8))
    tile_rows = max(8, _round_up(tile_rows, 8))      # sublane (8) alignment
    num_blocks = pl.cdiv(B, tile_rows)

    kernel = functools.partial(
        _fused_linear_mse_kernel,
        total_rows=B, tile_rows=tile_rows, n_out=n_out)

    partials = pl.pallas_call(
        kernel,
        out_shape=jax.ShapeDtypeStruct((num_blocks, 8, 128), jnp.float32),
        grid_spec=pltpu.PrefetchScalarGridSpec(
            num_scalar_prefetch=0,
            grid=(num_blocks,),
            in_specs=[
                # Batch tile of x; last block dim == full K so no (8,128) issue.
                pl.BlockSpec((tile_rows, K), lambda i: (i, 0)),
                # 2x32 weight: constant index_map -> DMA'd once, resident thereafter.
                pl.BlockSpec((n_out, K), lambda i: (0, 0)),
            ],
            # Per-block partials (no carried accumulator) keep the batch axis
            # truly parallel -> megacore-shardable on v7x.
            out_specs=pl.BlockSpec((1, 8, 128), lambda i: (i, 0, 0)),
        ),
        compiler_params=pltpu.CompilerParams(
            dimension_semantics=("parallel",),
        ),
    )(x.astype(jnp.float32), weight.astype(jnp.float32))

    total = jnp.sum(partials[:, 0, 0])
    return total / jnp.float32(B * n_out)     # mean over all B * 2 elements, applied once


if __name__ == "__main__":
    key = jax.random.PRNGKey(0)
    kx, kw = jax.random.split(key)

    B, K, N = 100, 32, 2                       # x: (batch, 32); Linear(32, 2, bias=False)
    x = jax.random.normal(kx, (B, K), dtype=jnp.float32)
    bound = 1.0 / (K ** 0.5)                   # torch Linear default init range
    w = jax.random.uniform(kw, (N, K), dtype=jnp.float32, minval=-bound, maxval=bound)

    # Small tile on purpose so this run exercises multi-block tiling and the
    # remainder-row masking path (100 % 32 != 0).  Production default is 8192 rows.
    loss = boring_model_forward(x, w, tile_rows=32)
    loss = jax.block_until_ready(loss)

    ref = jnp.mean((x @ w.T - 1.0) ** 2)
    assert jnp.allclose(loss, ref, rtol=1e-5, atol=1e-6), (loss, ref)
    print("KERNEL_OK")
</pallas_src>

<mosaic_0001>
module attributes {stable_mosaic.version = 11 : i64} {
  func.func @_fused_linear_mse_kernel(%arg0: i32, %arg1: memref<32x32xf32, #tpu.memory_space<vmem>>, %arg2: memref<2x32xf32, #tpu.memory_space<vmem>>, %arg3: memref<1x8x128xf32, #tpu.memory_space<vmem>>) attributes {dimension_semantics = [#tpu.dimension_semantics<parallel>], iteration_bounds = array<i64: 4>, scalar_prefetch = 0 : i64, scratch_operands = 0 : i64, tpu.core_type = #tpu.core_type<tc>, window_params = [{transform_indices = @transform_0, window_bounds = array<i64: 32, 32>}, {pipeline_mode = #tpu.pipeline_mode<synchronous>, transform_indices = @transform_1, window_bounds = array<i64: 2, 32>}, {transform_indices = @transform_2, window_bounds = array<i64: 1, 8, 128>}]} {
    %c0 = arith.constant 0 : index
    %c0_0 = arith.constant 0 : index
    %0 = vector.load %arg1[%c0, %c0_0] : memref<32x32xf32, #tpu.memory_space<vmem>>, vector<32x32xf32>
    %c0_1 = arith.constant 0 : index
    %c0_2 = arith.constant 0 : index
    %1 = vector.load %arg2[%c0_1, %c0_2] : memref<2x32xf32, #tpu.memory_space<vmem>>, vector<2x32xf32>
    %cst = arith.constant 0.000000e+00 : f32
    %2 = vector.broadcast %cst : f32 to vector<32x1xf32>
    %3 = vector.extract_strided_slice %1 {offsets = [0, 0], sizes = [1, 32], strides = [1, 1]} : vector<2x32xf32> to vector<1x32xf32>
    %4 = vector.broadcast %3 : vector<1x32xf32> to vector<32x32xf32>
    %5 = arith.mulf %0, %4 : vector<32x32xf32>
    %cst_3 = arith.constant dense<0.000000e+00> : vector<32xf32>
    %6 = vector.multi_reduction <add>, %5, %cst_3 [1] : vector<32x32xf32> to vector<32xf32>
    %7 = vector.shape_cast %6 : vector<32xf32> to vector<32x1xf32>
    %cst_4 = arith.constant 1.000000e+00 : f32
    %8 = vector.broadcast %cst_4 : f32 to vector<32x1xf32>
    %9 = arith.subf %7, %8 : vector<32x1xf32>
    %10 = arith.mulf %9, %9 : vector<32x1xf32>
    %11 = arith.addf %2, %10 : vector<32x1xf32>
    %12 = vector.extract_strided_slice %1 {offsets = [1, 0], sizes = [1, 32], strides = [1, 1]} : vector<2x32xf32> to vector<1x32xf32>
    %13 = vector.broadcast %12 : vector<1x32xf32> to vector<32x32xf32>
    %14 = arith.mulf %0, %13 : vector<32x32xf32>
    %cst_5 = arith.constant dense<0.000000e+00> : vector<32xf32>
    %15 = vector.multi_reduction <add>, %14, %cst_5 [1] : vector<32x32xf32> to vector<32xf32>
    %16 = vector.shape_cast %15 : vector<32xf32> to vector<32x1xf32>
    %cst_6 = arith.constant 1.000000e+00 : f32
    %17 = vector.broadcast %cst_6 : f32 to vector<32x1xf32>
    %18 = arith.subf %16, %17 : vector<32x1xf32>
    %19 = arith.mulf %18, %18 : vector<32x1xf32>
    %20 = arith.addf %11, %19 : vector<32x1xf32>
    %c32_i32 = arith.constant 32 : i32
    %21 = arith.muli %arg0, %c32_i32 : i32
    %22 = tpu.iota {dimensions = array<i32: 0>} : vector<32x1xi32>
    %23 = vector.broadcast %21 : i32 to vector<32x1xi32>
    %24 = arith.addi %23, %22 : vector<32x1xi32>
    %c100_i32 = arith.constant 100 : i32
    %25 = vector.broadcast %c100_i32 : i32 to vector<32x1xi32>
    %26 = arith.cmpi slt, %24, %25 : vector<32x1xi32>
    %cst_7 = arith.constant 0.000000e+00 : f32
    %27 = vector.broadcast %cst_7 : f32 to vector<32x1xf32>
    %28 = arith.select %26, %20, %27 : vector<32x1xi1>, vector<32x1xf32>
    %29 = vector.shape_cast %28 : vector<32x1xf32> to vector<1x32x1xf32>
    %cst_8 = arith.constant dense<0.000000e+00> : vector<1xf32>
    %30 = vector.multi_reduction <add>, %29, %cst_8 [1, 2] : vector<1x32x1xf32> to vector<1xf32>
    %31 = vector.shape_cast %30 : vector<1xf32> to vector<1x1x1xf32>
    %32 = vector.extract %31[0, 0, 0] : f32 from vector<1x1x1xf32>
    %33 = vector.broadcast %32 : f32 to vector<1x8x128xf32>
    %c0_9 = arith.constant 0 : index
    %c0_10 = arith.constant 0 : index
    %c0_11 = arith.constant 0 : index
    %34 = vector.load %arg3[%c0_9, %c0_10, %c0_11] : memref<1x8x128xf32, #tpu.memory_space<vmem>>, vector<1x8x128xf32>
    tpu.vector_store %arg3[%c0_9, %c0_10, %c0_11], %33 {strides = array<i32>} : memref<1x8x128xf32, #tpu.memory_space<vmem>>, vector<1x8x128xf32>,
    return
  }
  func.func @transform_0(%arg0: i32) -> (i32, i32) {
    %c0_i32 = arith.constant 0 : i32
    %c0_i32_0 = arith.constant 0 : i32
    return %arg0, %c0_i32 : i32, i32
  }
  func.func @transform_1(%arg0: i32) -> (i32, i32) {
    %c0_i32 = arith.constant 0 : i32
    %c0_i32_0 = arith.constant 0 : i32
    %c0_i32_1 = arith.constant 0 : i32
    return %c0_i32, %c0_i32_0 : i32, i32
  }
  func.func @transform_2(%arg0: i32) -> (i32, i32, i32) {
    %c0_i32 = arith.constant 0 : i32
    %c0_i32_0 = arith.constant 0 : i32
    %c0_i32_1 = arith.constant 0 : i32
    return %arg0, %c0_i32, %c0_i32_0 : i32, i32, i32
  }
}

</mosaic_0001>

<bundles_post_ra>
// kernel: boring_model_forward.1
= control target key start
LH: loop header
LB: loop body
LE: loop exit
PB: predicated region body
PF: predicated region fallthrough
CT: control target
= control target key end

     0   :  { %s377_s9 = smov 0   ;;  %s415_s0 = inlined_call_operand.vmem [shape: f32[100,32], index: 0, kind: input, shape index: {}]   ;;  %s416_s1 = inlined_call_operand.vmem [shape: f32[2,32], index: 1, kind: input, shape index: {}]   ;;  %s417_s2 = inlined_call_operand.vmem [shape: f32[4,8,128], index: 2, kind: output, shape index: {}]  }
   0x1 LB: > { %s383_s10 = sadd.s32 4294967295, %s360_s9   ;;  %p329_p0 = scmp.ge.s32.totalorder %s360_s9, 1  ;;  %s360_s9 = sphi %s377_s9, %s12_s9  }
   0x2   : > { %p121_p1 = scmp.lt.s32.totalorder %s360_s9, 5 }
   0x4   : > { %p122_p2 = pnand %p329_p0, %p121_p1 }
   0x5   : > { %s330_s11 = sshll.u32 (!%p122_p2), %s383_s10, 2  ;;  %s341_s18 = sshll.u32 (!%p122_p2), %s383_s10, 5 }
   0x6   : > { %125 = sbr.rel (%p122_p2) target bundleno = 384 (0x180), region = 28  ;;  %p151_p3 = scmp.lt.s32.totalorder (!%p122_p2), %s330_s11, 12 }
   0x7   : > { %p160_p4 = scmp.lt.s32.totalorder (!%p122_p2), %s383_s10, 3 }
   0xb   : > { %v169_v0 = vlaneseq  ;;  %s419_s11 = smov (!%p151_p3, %s330_s11), 12  ;;  %v168_v2 = vld [vmem:[%s416_s1] sm:$0x3]  ;;  %vm177_vm0 = vcmask 261120   ;;  %v240_v32 = vstv %s341_s18  ;;  %vm253_vm3 = vcmask 7168   ;;  %s421_s10 = smov (!%p160_p4, %s383_s10), 3 }
   0xc   : > { %s331_s14 = sshll.u32 %s419_s11, 3  ;;  %s332_s19 = sshll.u32 %s421_s10, 3 }
   0xd   : > { %v170_v1 = vshrl.u32 %v169_v0, 7  ;;  %s154_s17 = scalar_lea.vmem %s415_s0, %s331_s14  ;;  %s163_s22 = scalar_lea.vmem %s417_s2, %s332_s19 }
   0xe   : > { %v164_v7 = vld [vmem:[%s154_s17] sm:$0xff]  ;;  %v165_v8 = vld [vmem:[%s154_s17 + $0x8] sm:$0xff]  ;;  %v166_v13 = vld [vmem:[%s154_s17 + $0x10] sm:$0xff] }
   0xf   : > { %v204_v3 = vsub.s32 1, %v170_v1  ;;  %v171_v4 = vsub.s32 0, %v170_v1  ;;  %v167_v20 = vld [vmem:[%s154_s17 + $0x18] sm:$0xff]  ;;  %v237_v29 = vadd.s32 8, %v170_v1  ;;  %v238_v36 = vadd.s32 16, %v170_v1 }
  0x10   : > { %v241_v41 = vadd.s32 %v240_v32, %v170_v1  ;;  %v239_v47 = vadd.s32 24, %v170_v1 }
  0x11   : > { %v205_v5 = vrot.slane %v168_v2, %v204_v3  ;;  %v172_v6 = vrot.slane %v168_v2, %v171_v4  ;;  %v242_v34 = vadd.s32 %v240_v32, %v237_v29  ;;  %v243_v45 = vadd.s32 %v240_v32, %v238_v36 }
  0x12   : > { %vm245_vm2 = vcmp.lt.s32.totalorder %v241_v41, 100  ;;  %v244_v57 = vadd.s32 %v240_v32, %v239_v47 }
  0x13   : > { %v206_v9 = vmul.f32 %v205_v5, %v164_v7  ;;  %v173_v10 = vmul.f32 %v172_v6, %v164_v7  ;;  %v207_v11 = vmul.f32 %v205_v5, %v165_v8  ;;  %v174_v12 = vmul.f32 %v172_v6, %v165_v8 }
  0x14   : > { %v208_v18 = vmul.f32 %v205_v5, %v166_v13  ;;  %v175_v19 = vmul.f32 %v172_v6, %v166_v13  ;;  %v209_v23 = vmul.f32 %v205_v5, %v167_v20  ;;  %v176_v24 = vmul.f32 %v172_v6, %v167_v20 }
  0x15   : > { %v210_v14 = vsel %vm177_vm0, %v206_v9, 0.0  ;;  %v178_v15 = vsel %vm177_vm0, %v173_v10, 0.0  ;;  %v213_v16 = vsel %vm177_vm0, %v207_v11, 0.0  ;;  %v181_v17 = vsel %vm177_vm0, %v174_v12, 0.0 }
  0x16   : > { %211 = vadd.xlane.f32.xlu1 %v210_v14  ;;  %179 = vadd.xlane.f32.xlu0 %v178_v15  ;;  %v216_v21 = vsel %vm177_vm0, %v208_v18, 0.0  ;;  %v184_v22 = vsel %vm177_vm0, %v175_v19, 0.0  ;;  %v219_v25 = vsel %vm177_vm0, %v209_v23, 0.0  ;;  %v187_v26 = vsel %vm177_vm0, %v176_v24, 0.0 }
  0x17   : > { %vm246_vm1 = vcmp.lt.s32.totalorder %v242_v34, 100  ;;  %vm247_vm4 = vcmp.lt.s32.totalorder %v243_v45, 100  ;;  %vm248_vm5 = vcmp.lt.s32.totalorder %v244_v57, 100 }
  0x1a   : > { %214 = vadd.xlane.f32.xlu1 %v213_v16  ;;  %182 = vadd.xlane.f32.xlu0 %v181_v17 }
  0x1e   : > { %217 = vadd.xlane.f32.xlu1 %v216_v21  ;;  %185 = vadd.xlane.f32.xlu0 %v184_v22 }
  0x22   : > { %220 = vadd.xlane.f32.xlu1 %v219_v25  ;;  %188 = vadd.xlane.f32.xlu0 %v187_v26 }
  0x9f   : > { %v212_v27 = vpop.xlane.xlu1 %211  ;;  %v180_v28 = vpop.xlane.xlu0 %179 }
  0xa0   : > { %v337_v30 = vadd.f32 -1.0, %v212_v27  ;;  %v333_v31 = vadd.f32 -1.0, %v180_v28 }
  0xa2   : > { %v226_v37 = vmul.f32 %v337_v30, %v337_v30  ;;  %v194_v38 = vmul.f32 %v333_v31, %v333_v31 }
  0xa3   : > { %v215_v33 = vpop.xlane.xlu1 %214  ;;  %v183_v35 = vpop.xlane.xlu0 %182 }
  0xa4   : > { %v338_v39 = vadd.f32 -1.0, %v215_v33  ;;  %v334_v40 = vadd.f32 -1.0, %v183_v35  ;;  %v230_v48 = vadd.f32 %v226_v37, %v194_v38 }
  0xa6   : > { %v227_v42 = vmul.f32 %v338_v39, %v338_v39  ;;  %v195_v43 = vmul.f32 %v334_v40, %v334_v40  ;;  %v249_v58 = vsel %vm245_vm2, %v230_v48, 0.0 }
  0xa7   : > { %v218_v44 = vpop.xlane.xlu1 %217  ;;  %v186_v46 = vpop.xlane.xlu0 %185  ;;  %v254_v2 = vsel %vm253_vm3, %v249_v58, 0.0 }
  0xa8   : > { %v231_v49 = vadd.f32 %v227_v42, %v195_v43  ;;  %v339_v50 = vadd.f32 -1.0, %v218_v44  ;;  %v335_v51 = vadd.f32 -1.0, %v186_v46 }
  0xaa   : > { %v250_v52 = vsel %vm246_vm1, %v231_v49, 0.0  ;;  %v228_v53 = vmul.f32 %v339_v50, %v339_v50  ;;  %v196_v54 = vmul.f32 %v335_v51, %v335_v51 }
  0xab   : > { %v221_v55 = vpop.xlane.xlu1 %220  ;;  %v189_v56 = vpop.xlane.xlu0 %188  ;;  %v255_v62 = vsel %vm253_vm3, %v250_v52, 0.0 }
  0xac   : > { %v232_v59 = vadd.f32 %v228_v53, %v196_v54  ;;  %v340_v60 = vadd.f32 -1.0, %v221_v55  ;;  %v336_v61 = vadd.f32 -1.0, %v189_v56  ;;  %v256_v5 = vadd.f32 %v255_v62, %v254_v2 }
  0xae   : > { %v251_v63 = vsel %vm247_vm4, %v232_v59, 0.0  ;;  %v229_v0 = vmul.f32 %v340_v60, %v340_v60  ;;  %v197_v1 = vmul.f32 %v336_v61, %v336_v61 }
  0xaf   : > { %v257_v3 = vsel %vm253_vm3, %v251_v63, 0.0 }
  0xb0   : > { %v233_v4 = vadd.f32 %v229_v0, %v197_v1  ;;  %v258_v7 = vadd.f32 %v257_v3, %v256_v5 }
  0xb2   : > { %v252_v6 = vsel %vm248_vm5, %v233_v4, 0.0 }
  0xb3   : > { %v259_v8 = vsel %vm253_vm3, %v252_v6, 0.0 }
  0xb4   : > { %v260_v9 = vadd.f32 %v259_v8, %v258_v7 }
  0xb6   : > { %261 = vadd.xlane.f32.xlu0 %v260_v9 }
 0x13f   : > { %v262_v10 = vpop.xlane.xlu0 %261 }
 0x140   : > { %v263_v11 = vrot.slane %v262_v10, 4 }
 0x142   : > { %v264_v12 = vadd.f32 %v263_v11, %v262_v10 }
 0x144   : > { %v265_v13 = vrot.slane %v264_v12, 2 }
 0x146   : > { %v266_v14 = vadd.f32 %v265_v13, %v264_v12 }
 0x148   : > { %v267_v15 = vrot.slane %v266_v14, 1 }
 0x14a   : > { %v268_v16 = vadd.f32 %v267_v15, %v266_v14 }
 0x14c   : > { %344 = vpush %v268_v16 }
 0x17d   : > { %s345_s23 = spop %344 }
 0x17e   : > { %v270_v17 = vstv %s345_s23 }
 0x17f   : > { %271 = vst [vmem:[%s163_s22] sm:$0xff] %v270_v17 }
 0x180 PF: > { %s12_s9 = sadd.s32 1, %s360_s9  }
 0x181   : > { %p9_p5 = scmp.ge.s32.totalorder %s12_s9, 6  }
 0x183   :  { %11 = sbr.rel (!%p9_p5) target bundleno = 1 (0x1), region = 58 }

</bundles_post_ra>
